<compile_context>
chip_gen: v7x
topology: tpu7x:2x2x1
jax: 0.10.0
libtpu: 0.0.40
codegen_flags: <defaults>
</compile_context>

<pallas_src>
import math
import functools

import jax
import jax.numpy as jnp
from jax.experimental import pallas as pl
from jax.experimental.pallas import tpu as pltpu


_SQRT2 = math.sqrt(2.0)
_LANES = 128


def _activate_kernel(x_ref, o_ref, *, activate_fun):
    x = x_ref[...]
    if activate_fun == "relu":
        # Stay in the native dtype (no float promotion for int/bf16 inputs).
        o_ref[...] = jnp.maximum(x, jnp.zeros_like(x))
    elif activate_fun == "gelu":
        # Exact erf-based gelu to match torch: x * 0.5 * (1 + erf(x / sqrt(2))).
        # TODO(synk): if the model tolerates tanh-approx gelu numerics, switch to
        # it — tanh runs in the otherwise-idle EUP slot, while lax.erf is a VALU
        # polynomial that can become the binding unit at v7x HBM rates.
        xf = x.astype(jnp.float32)
        y = xf * 0.5 * (1.0 + jax.lax.erf(xf / _SQRT2))
        o_ref[...] = y.astype(o_ref.dtype)
    else:
        raise ValueError(f"unsupported activate_fun: {activate_fun}")


def _activate_jnp(x, activate_fun):
    """Tiny jnp fallback used only for the <128-element ragged tail."""
    if activate_fun == "relu":
        return jnp.maximum(x, jnp.zeros_like(x))
    xf = x.astype(jnp.float32)
    return (xf * 0.5 * (1.0 + jax.lax.erf(xf / _SQRT2))).astype(x.dtype)


def _sublane_multiple(dtype):
    """Dtype-packed sublane multiple: 8 (f32), 16 (bf16/f16), 32 (int8/fp8)."""
    return max(8, 32 // jnp.dtype(dtype).itemsize)


def _select_tuning():
    """Per-generation tile target / scoped-VMEM limit / min grid steps."""
    kind = ""
    try:
        kind = jax.devices()[0].device_kind.lower()
    except Exception:  # pragma: no cover - defensive; fall back to conservative
        pass
    if ("v7" in kind) or ("7x" in kind):
        # 8 MiB tiles -> ~32 MiB live (in+out, double-buffered); needs explicit
        # scoped-VMEM limit above the 32 MiB default but well under 64 MiB phys.
        return {"tile_bytes": 8 << 20, "vmem_limit": 48 << 20, "min_steps": 4}
    if ("v6" in kind) or ("6e" in kind):
        # 4 MiB tiles -> 16 MiB live, inside the 32 MiB default scoped VMEM.
        return {"tile_bytes": 4 << 20, "vmem_limit": None, "min_steps": 1}
    # v5e / older / unknown: stay conservative (16 MiB default scoped VMEM).
    return {"tile_bytes": 2 << 20, "vmem_limit": None, "min_steps": 1}


def _choose_layout(m, itemsize, sub, target_tile_bytes, min_steps):
    """Pick (rows, lane, blk_rows) for a flat length-m slab (m % 128 == 0)."""
    lane = _LANES
    for cand in (4096, 2048, 1024, 512, 256):
        if m % cand == 0:
            lane = cand
            break
    rows = m // lane
    # Largest row-block that keeps a tile near the per-generation byte target,
    # rounded to the dtype-packed sublane multiple.
    blk_rows = max(sub, (target_tile_bytes // (lane * itemsize)) // sub * sub)
    # On v7x, guarantee >=min_steps grid steps (when the slab is big enough)
    # so the "parallel" axis can actually be sharded across both TensorCores.
    if min_steps > 1 and m * itemsize > (1 << 20) and rows >= min_steps * sub:
        per_step = (rows + min_steps - 1) // min_steps
        per_step = ((per_step + sub - 1) // sub) * sub
        blk_rows = min(blk_rows, per_step)
    if blk_rows >= rows:
        blk_rows = rows  # single full-extent block (legal even if rows % sub != 0)
    return rows, lane, blk_rows


def activate_fun(x, activate_fun="gelu"):
    """Pallas equivalent of ActivateFun.forward (shape/dtype preserving)."""
    if activate_fun not in ("relu", "gelu"):
        raise ValueError(f"unsupported activate_fun: {activate_fun}")

    orig_shape = x.shape
    orig_dtype = x.dtype
    n = x.size
    if n == 0:
        return x

    x_flat = x.reshape(-1)
    tail = n % _LANES
    aligned = n - tail

    if aligned == 0:
        # Fewer than 128 elements total — not worth a kernel launch.
        return _activate_jnp(x_flat, activate_fun).reshape(orig_shape)

    tuning = _select_tuning()
    itemsize = jnp.dtype(orig_dtype).itemsize
    sub = _sublane_multiple(orig_dtype)
    rows, lane, blk_rows = _choose_layout(
        aligned, itemsize, sub, tuning["tile_bytes"], tuning["min_steps"]
    )

    # No jnp.pad / post-kernel slice round-trips: the kernel only sees the
    # 128-aligned prefix (a contiguous-prefix view), the tail stays in jnp.
    x2d = (x_flat[:aligned] if tail else x_flat).reshape(rows, lane)

    grid = (pl.cdiv(rows, blk_rows),)
    kernel = functools.partial(_activate_kernel, activate_fun=activate_fun)

    out2d = pl.pallas_call(
        kernel,
        out_shape=jax.ShapeDtypeStruct((rows, lane), orig_dtype),
        grid_spec=pltpu.PrefetchScalarGridSpec(
            num_scalar_prefetch=0,
            grid=grid,
            # TODO(synk): sweep pipeline_mode=pl.Buffered(3) on v7x if a trace
            # still shows exposed DMA on short grids after the bigger tiles.
            in_specs=[pl.BlockSpec((blk_rows, lane), lambda i: (i, 0))],
            out_specs=pl.BlockSpec((blk_rows, lane), lambda i: (i, 0)),
        ),
        compiler_params=pltpu.CompilerParams(
            dimension_semantics=("parallel",),
            vmem_limit_bytes=tuning["vmem_limit"],
        ),
    )(x2d)

    out_flat = out2d.reshape(-1)
    if tail:
        tail_out = _activate_jnp(x_flat[aligned:], activate_fun)
        out_flat = jnp.concatenate([out_flat, tail_out])
    return out_flat.reshape(orig_shape)


def _ref_gelu(x):
    xf = x.astype(jnp.float32)
    return (xf * 0.5 * (1.0 + jax.lax.erf(xf / _SQRT2))).astype(x.dtype)


if __name__ == "__main__":
    key = jax.random.PRNGKey(0)
    k0, k1, k2 = jax.random.split(key, 3)

    # Small NCHW-like tensor, consistent with typical activation usage.
    x = jax.random.normal(k0, (2, 4, 16, 16), dtype=jnp.float32)

    # gelu path (lane-aligned size -> single full-extent block)
    y_gelu = jax.block_until_ready(activate_fun(x, "gelu"))
    assert y_gelu.shape == x.shape and y_gelu.dtype == x.dtype
    assert jnp.allclose(y_gelu, _ref_gelu(x), atol=1e-5, rtol=1e-5), "gelu mismatch"

    # relu path (native dtype, no promotion)
    y_relu = jax.block_until_ready(activate_fun(x, "relu"))
    assert jnp.allclose(y_relu, jnp.maximum(x, 0.0), atol=0.0), "relu mismatch"

    # ragged-size tensor exercises the aligned-prefix kernel + jnp tail path
    x_odd = jax.random.normal(k1, (3, 5, 13), dtype=jnp.float32)
    y_odd = jax.block_until_ready(activate_fun(x_odd, "gelu"))
    assert y_odd.shape == x_odd.shape
    assert jnp.allclose(y_odd, _ref_gelu(x_odd), atol=1e-5, rtol=1e-5), "ragged gelu mismatch"

    # medium tensor exercises the wide-lane multi-/single-step grid path
    x_med = jax.random.normal(k2, (4, 512, 512), dtype=jnp.float32)
    y_med = jax.block_until_ready(activate_fun(x_med, "gelu"))
    assert jnp.allclose(y_med, _ref_gelu(x_med), atol=1e-5, rtol=1e-5), "medium gelu mismatch"

    # bf16 relu stays exact in the native dtype (sublane packing = 16)
    x_bf16 = x.astype(jnp.bfloat16)
    y_bf16 = jax.block_until_ready(activate_fun(x_bf16, "relu"))
    assert y_bf16.dtype == jnp.bfloat16
    assert jnp.all(y_bf16 == jnp.maximum(x_bf16, jnp.zeros_like(x_bf16))), "bf16 relu mismatch"

    print("KERNEL_OK")
</pallas_src>

<mosaic_0001>
module attributes {stable_mosaic.version = 11 : i64} {
  func.func @_activate_kernel(%arg0: i32, %arg1: memref<1x2048xf32, #tpu.memory_space<vmem>>, %arg2: memref<1x2048xf32, #tpu.memory_space<vmem>>) attributes {dimension_semantics = [#tpu.dimension_semantics<parallel>], iteration_bounds = array<i64: 1>, scalar_prefetch = 0 : i64, scratch_operands = 0 : i64, tpu.core_type = #tpu.core_type<tc>, window_params = [{transform_indices = @transform_0, window_bounds = array<i64: 1, 2048>}, {transform_indices = @transform_1, window_bounds = array<i64: 1, 2048>}]} {
    %c0 = arith.constant 0 : index
    %c0_0 = arith.constant 0 : index
    %0 = vector.load %arg1[%c0, %c0_0] : memref<1x2048xf32, #tpu.memory_space<vmem>>, vector<1x2048xf32>
    %cst = arith.constant 5.000000e-01 : f32
    %1 = vector.broadcast %cst : f32 to vector<1x2048xf32>
    %2 = arith.mulf %0, %1 : vector<1x2048xf32>
    %cst_1 = arith.constant 1.41421354 : f32
    %3 = vector.broadcast %cst_1 : f32 to vector<1x2048xf32>
    %4 = arith.divf %0, %3 : vector<1x2048xf32>
    %5 = math.erf %4 : vector<1x2048xf32>
    %cst_2 = arith.constant 1.000000e+00 : f32
    %6 = vector.broadcast %cst_2 : f32 to vector<1x2048xf32>
    %7 = arith.addf %6, %5 : vector<1x2048xf32>
    %8 = arith.mulf %2, %7 : vector<1x2048xf32>
    %c0_3 = arith.constant 0 : index
    %c0_4 = arith.constant 0 : index
    %9 = vector.load %arg2[%c0_3, %c0_4] : memref<1x2048xf32, #tpu.memory_space<vmem>>, vector<1x2048xf32>
    tpu.vector_store %arg2[%c0_3, %c0_4], %8 {strides = array<i32>} : memref<1x2048xf32, #tpu.memory_space<vmem>>, vector<1x2048xf32>,
    return
  }
  func.func @transform_0(%arg0: i32) -> (i32, i32) {
    %c0_i32 = arith.constant 0 : i32
    %c0_i32_0 = arith.constant 0 : i32
    return %arg0, %c0_i32 : i32, i32
  }
  func.func @transform_1(%arg0: i32) -> (i32, i32) {
    %c0_i32 = arith.constant 0 : i32
    %c0_i32_0 = arith.constant 0 : i32
    return %arg0, %c0_i32 : i32, i32
  }
}

</mosaic_0001>

<bundles_post_ra>
// kernel: tpu_custom_call.1
= control target key start
LH: loop header
LB: loop body
LE: loop exit
PB: predicated region body
PF: predicated region fallthrough
CT: control target
= control target key end

     0   :  { %6 = vsyncpa [#allocation3], 0  ;;  %s141_s0 = inlined_call_operand.hbm [shape: f32[1,2048], index: 0, kind: input, shape index: {}]   ;;  %s142_s1 = inlined_call_operand.hbm [shape: f32[1,2048], index: 1, kind: output, shape index: {}]  }
   0x1   :  { %7 = vsyncpa [#allocation4], 0  ;;  %s105_s6 = smov [#allocation2]   ;;  %s57_s10 = scalar_lea.hbm %s141_s0, 256 }
   0x2   :  { %s14_s7 = sshll.u32 %s105_s6, 4  ;;  %p58_p0 = scmp.ne.s32.totalorder %s141_s0, %s57_s10  ;;  %s15_s7 = int_to_ptr.vmem [resolvable:$true] %s14_s7 }
   0x3   :  { %p61_p1 = scmp.lt.u32.totalorder %s57_s10, %s141_s0 }
   0x5   :  { %p63_p2 = pnand %p61_p1, %p58_p0 }
   0x7   :  { %66 = shalt.err (!%p63_p2)
}
   0x8   :  { %s67_s15 = scalar_lea.vmem %s15_s7, 256  ;;  %p72_p4 = scmp.lt.s32.totalorder %s15_s7, %s15_s7 }
   0x9   :  { %p68_p3 = scmp.ne.s32.totalorder %s15_s7, %s67_s15  ;;  %p73_p5 = scmp.lt.s32.totalorder %s67_s15, %s67_s15 }
   0xb   :  { %p74_p6 = por %p73_p5, %p72_p4 }
   0xd   :  { %p75_p7 = pnand %p74_p6, %p68_p3 }
   0xf   :  { %78 = shalt.err (!%p75_p7)
}
  0x10   :  { %17 = dma.hbm_to_vmem [thread:$0]  %s141_s0, 256, %s15_s7, [#allocation3]  }
  0x11   :  { %101 = dma.done.wait [#allocation3], 256  }
  0x12   :  { %102 = vsyncadd [#allocation3], 4294967040  ;;  %v21_v0 = vld [vmem:[#allocation2] sm:$0xff]  ;;  %v22_v1 = vld [vmem:[#allocation2 + $0x8] sm:$0xff]  ;;  %s106_s18 = smov [#allocation5]  }
  0x13   :  { %v26_v2 = vmul.f32 0.70710677, %v21_v0  ;;  %v27_v3 = vmul.f32 0.70710677, %v22_v1  ;;  %v23_v4 = vmul.f32 0.5, %v21_v0  ;;  %v24_v6 = vmul.f32 0.5, %v22_v1 }
  0x14   :  { %s42_s19 = sshll.u32 %s106_s18, 4  ;;  %s43_s19 = int_to_ptr.vmem [resolvable:$true] %s42_s19 }
  0x15   :  { %53 = verf.f32 %v26_v2  ;;  %s79_s0 = scalar_lea.vmem %s43_s19, 256  ;;  %p84_p9 = scmp.lt.s32.totalorder %s43_s19, %s43_s19 }
  0x16   :  { %55 = verf.f32 %v27_v3  ;;  %p80_p8 = scmp.ne.s32.totalorder %s43_s19, %s79_s0  ;;  %p85_p10 = scmp.lt.s32.totalorder %s79_s0, %s79_s0 }
  0x18   :  { %p86_p11 = por %p85_p10, %p84_p9 }
  0x1a   :  { %p87_p12 = pnand %p86_p11, %p80_p8 }
  0x1f   :  { %v54_v5 = vpop.eup %53 }
  0x20   :  { %v56_v7 = vpop.eup %55  ;;  %v30_v8 = vadd.f32 1.0, %v54_v5 }
  0x21   :  { %v31_v9 = vadd.f32 1.0, %v56_v7 }
  0x22   :  { %v32_v10 = vmul.f32 %v30_v8, %v23_v4 }
  0x23   :  { %v33_v11 = vmul.f32 %v31_v9, %v24_v6 }
  0x24   :  { %34 = vst [vmem:[#allocation5] sm:$0xff] %v32_v10 }
  0x25   :  { %35 = vst [vmem:[#allocation5 + $0x8] sm:$0xff] %v33_v11 }
  0x26   :  { %90 = shalt.err (!%p87_p12)
}
  0x27   :  { %s91_s22 = scalar_lea.hbm %s142_s1, 256 }
  0x28   :  { %p92_p13 = scmp.ne.s32.totalorder %s142_s1, %s91_s22  ;;  %p95_p0 = scmp.lt.u32.totalorder %s91_s22, %s142_s1 }
  0x2a   :  { %p97_p1 = pnand %p95_p0, %p92_p13 }
  0x2c   :  { %100 = shalt.err (!%p97_p1)
}
  0x2d   :  { %45 = dma.vmem_to_hbm [thread:$0]  %s43_s19, 256, %s142_s1, [#allocation4]  }
  0x2e   :  { %103 = dma.done.wait [#allocation4], 256  }
  0x2f   :  { %104 = vsyncadd [#allocation4], 4294967040 }
  0x30   :  { %49 = vsyncpa [#allocation3], 1 }
  0x31   :  { %50 = vsyncpa [#allocation4], 1 }

</bundles_post_ra>
